<compile_context>
chip_gen: v5e
topology: v5e:2x2
jax: 0.10.0
libtpu: 0.0.40
codegen_flags: <defaults>
</compile_context>

<pallas_src>
from abc import ABC, abstractmethod
from typing import Any, Dict

import jax
import jax.numpy as jnp
from jax.experimental import pallas as pl
from jax.experimental.pallas import tpu as pltpu


# ----------------------------------------------------------------------------
# Tunables.
# ----------------------------------------------------------------------------
# Below this size, copy time (< a few us of HBM traffic even on v5e) is dwarfed
# by dispatch overhead -> pass the array through untouched unless the caller
# explicitly asks for a fresh buffer.
_MIN_PALLAS_BYTES = 8 * 1024 * 1024


# ----------------------------------------------------------------------------
# Pallas kernel: identity copy as one direct HBM->HBM DMA (no VMEM staging).
# ----------------------------------------------------------------------------
def _dma_copy_kernel(x_hbm, o_hbm, sem):
    cp = pltpu.make_async_copy(x_hbm, o_hbm, sem)
    cp.start()
    cp.wait()


def _hbm_copy(x: jax.Array) -> jax.Array:
    """Materialized identity copy: single HBM->HBM DMA, any shape / dtype."""
    nbytes = x.size * x.dtype.itemsize
    return pl.pallas_call(
        _dma_copy_kernel,
        out_shape=jax.ShapeDtypeStruct(x.shape, x.dtype),
        in_specs=[pl.BlockSpec(memory_space=pl.ANY)],   # raw HBM ref, no auto-DMA
        out_specs=pl.BlockSpec(memory_space=pl.ANY),    # raw HBM ref, no auto-DMA
        scratch_shapes=[pltpu.SemaphoreType.DMA],
        cost_estimate=pl.CostEstimate(
            flops=0, transcendentals=0, bytes_accessed=2 * nbytes),
    )(x)


def pallas_identity(x: jax.Array, *, force_copy: bool = False) -> jax.Array:
    """Identity forward.

    Zero-copy pass-through for small inputs (fastest possible identity);
    otherwise — or when ``force_copy=True`` — a single HBM->HBM DMA copy that
    returns a fresh buffer at near-full HBM bandwidth.
    """
    nbytes = x.size * x.dtype.itemsize
    if not force_copy and nbytes < _MIN_PALLAS_BYTES:
        return x
    return _hbm_copy(x)


# ----------------------------------------------------------------------------
# JAX-side mirror of the PyTorch BaseLayer class hierarchy.
# ----------------------------------------------------------------------------
class BaseLayer(ABC):
    """基础层接口 (JAX/Pallas port)."""

    def __init__(self, config: Dict[str, Any]):
        self.config = config

    @abstractmethod
    def forward(self, x):
        pass

    def __call__(self, x, **kwargs):
        return self.forward(x, **kwargs)

    def get_config(self) -> Dict[str, Any]:
        """获取层配置"""
        return self.config

    @classmethod
    def from_config(cls, config: Dict[str, Any]) -> "BaseLayer":
        """从配置创建层"""
        return cls(config)


class _IdentityLayer(BaseLayer):
    """Minimal concrete subclass realizing the base-class identity contract."""

    def forward(self, x, **kwargs):
        return pallas_identity(x, **kwargs)


if __name__ == "__main__":
    key = jax.random.PRNGKey(0)
    k1, k2 = jax.random.split(key)

    layer = _IdentityLayer.from_config({"name": "base_layer", "dtype": "float32"})

    # (a) Small NCHW input (module-consistent shape): zero-copy fast path.
    x = jax.random.normal(k1, (2, 4, 16, 16), dtype=jnp.float32)   # layout: NCHW
    y = jax.block_until_ready(layer(x))
    assert y.shape == x.shape and y.dtype == x.dtype
    assert bool(jnp.array_equal(y, x))

    # (b) Exercise the Pallas HBM->HBM DMA copy kernel once (explicit fresh
    #     buffer requested) and verify it is bit-exact.
    y_copy = jax.block_until_ready(layer(x, force_copy=True))
    assert y_copy.shape == x.shape and y_copy.dtype == x.dtype
    assert bool(jnp.array_equal(y_copy, x))

    # (c) A slightly larger activation through the same kernel, non-lane-dense
    #     trailing dim on purpose — the DMA path has no tiling constraints.
    x2 = jax.random.normal(k2, (2, 8, 16, 24), dtype=jnp.bfloat16)
    y2 = jax.block_until_ready(layer(x2, force_copy=True))
    assert y2.shape == x2.shape and y2.dtype == x2.dtype
    assert bool(jnp.array_equal(y2, x2))

    # Config round-trip.
    assert layer.get_config()["name"] == "base_layer"

    print("KERNEL_OK")
</pallas_src>

<mosaic_0001>
module attributes {stable_mosaic.version = 11 : i64} {
  func.func @_dma_copy_kernel(%arg0: memref<2x4x16x16xf32, #tpu.memory_space<any>>, %arg1: memref<2x4x16x16xf32, #tpu.memory_space<any>>, %arg2: memref<!tpu.dma_semaphore, #tpu.memory_space<semaphore_mem>>) attributes {dimension_semantics = [], scalar_prefetch = 0 : i64, scratch_operands = 1 : i64, tpu.core_type = #tpu.core_type<tc>} {
    tpu.enqueue_dma source(%arg0 : memref<2x4x16x16xf32, #tpu.memory_space<any>>) target(%arg1 : memref<2x4x16x16xf32, #tpu.memory_space<any>>) target_semaphore(%arg2 : memref<!tpu.dma_semaphore, #tpu.memory_space<semaphore_mem>>)
    tpu.wait_dma2 semaphore(%arg2 : memref<!tpu.dma_semaphore, #tpu.memory_space<semaphore_mem>>) src(%arg0 : memref<2x4x16x16xf32, #tpu.memory_space<any>>) dst(%arg1 : memref<2x4x16x16xf32, #tpu.memory_space<any>>)
    return
  }
}

</mosaic_0001>

<bundles_post_ra>
// kernel: tpu_custom_call.1
= control target key start
LH: loop header
LB: loop body
LE: loop exit
PB: predicated region body
PF: predicated region fallthrough
CT: control target
= control target key end

     0   :  { %s34_s12 = smov [#allocation2]   ;;  %s35_s13 = smov [#allocation3]   ;;  %s53_s0 = inlined_call_operand.hbm [shape: f32[2,4,16,16], index: 0, kind: input, shape index: {}]   ;;  %s54_s1 = inlined_call_operand.hbm [shape: f32[2,4,16,16], index: 1, kind: output, shape index: {}]  }
   0x1   :  { %s10_s8 = sshll.u32 %s53_s0, 4  ;;  %s12_s11 = sshll.u32 %s54_s1, 4  ;;  %s11_s8 = int_to_ptr.hbm [resolvable:$true] %s10_s8  ;;  %s13_s11 = int_to_ptr.hbm [resolvable:$true] %s12_s11 }
   0x2   :  { %s36_s14 = smov 0  }
   0x3   :  { %16 = dma.general %s11_s8, 2048, %s13_s11, %s34_s12, %s35_s13, [#allocation4], %s36_s14, 0  }
   0x4   :  { %32 = dma.done.wait [#allocation2], 2048 }
   0x5   :  { %33 = vsyncadd [#allocation2], 4294965248 }
   0x6   :  { %22 = vsyncmov [#allocation2] }
   0x9   :  { %s23_s15 = vpop.sfrf %22 }
   0xa   :  { %p28_p0 = scmp.ne.s32.totalorder %s23_s15, 0 }
   0xc   :  { %27 = shalt.err (%p28_p0)  }

</bundles_post_ra>
